<compile_context>
chip_gen: v6e
topology: v6e:2x2x1
jax: 0.10.0
libtpu: 0.0.40
codegen_flags: <defaults>
</compile_context>

<pallas_src>
import functools
import math

import jax
import jax.numpy as jnp
from jax.experimental import pallas as pl
from jax.experimental.pallas import tpu as pltpu


def _sublane_multiple(dtype) -> int:
    # Native TPU tile is (8,128) for 4-byte, (16,128) for 2-byte, (32,128)
    # for 1-byte elements (sub-32-bit packs along sublanes).
    itemsize = jnp.dtype(dtype).itemsize
    return max(8, 32 // max(1, itemsize))


def _vmem_capacity_bytes() -> int:
    try:
        info = pltpu.get_tpu_info()
        cap = getattr(info, "vmem_capacity_bytes", None)
        if cap:
            return int(cap)
    except Exception:
        pass
    return 64 << 20  # conservative fallback (v7x per-TensorCore VMEM)


def _rmsnorm_kernel(x_ref, w_ref, o_ref, *, eps: float, low_precision_scale: bool):
    # x_ref: (tm, D)   w_ref: (1, D)   o_ref: (tm, D)
    x = x_ref[...]
    xf = x.astype(jnp.float32)
    ms = jnp.mean(xf * xf, axis=-1, keepdims=True) + eps     # (tm, 1), f32 accumulation
    inv = jax.lax.rsqrt(ms)                                   # EUP rsqrt
    if low_precision_scale:
        # 16-bit scaling pass (bf16 VALU on v6e/v7x): reduction stayed f32,
        # only the two multiplies + store run in the input dtype.
        o_ref[...] = (x * w_ref[...].astype(x.dtype) * inv.astype(x.dtype)).astype(o_ref.dtype)
    else:
        o_ref[...] = (xf * w_ref[...].astype(jnp.float32) * inv).astype(o_ref.dtype)


def rms_norm(x, weight, eps: float, *, tm: int | None = None):
    """x: (..., D). weight: (D,). Returns same shape/dtype as x."""
    orig_shape = x.shape
    D = orig_shape[-1]
    M = math.prod(orig_shape[:-1])
    x2d = x.reshape(M, D)
    w2d = weight.reshape(1, D)

    in_size = jnp.dtype(x.dtype).itemsize
    sub = _sublane_multiple(x.dtype)

    # Tile budget: 2x double-buffered input + 2x output tiles + ~2 f32
    # temporaries must fit comfortably in VMEM (128 MiB v5e/v6e, 64 MiB v7x).
    vmem_cap = _vmem_capacity_bytes()
    budget = int(vmem_cap * 0.6)
    per_row = D * (2 * in_size + 2 * in_size + 2 * 4)
    tm_cap = max(sub, (budget // max(per_row, 1)) // sub * sub)
    tm = 1024 if tm is None else tm
    tm = min(tm, tm_cap)
    if M <= tm:
        tm = M                         # full-extent block is always legal
    else:
        tm = max(sub, (tm // sub) * sub)

    grid = (pl.cdiv(M, tm),)           # ragged last block handled by Pallas

    # Weight is a tiny constant row: keep it resident, single-buffered.
    try:
        w_spec = pl.BlockSpec((1, D), lambda i: (0, 0), pipeline_mode=pl.Buffered(1))
    except TypeError:  # older BlockSpec without pipeline_mode kwarg
        w_spec = pl.BlockSpec((1, D), lambda i: (0, 0))

    vmem_limit = int(min(max(vmem_cap - (8 << 20), 32 << 20),
                         max(budget + (8 << 20), 32 << 20)))

    cost = pl.CostEstimate(
        flops=4 * M * D,                                   # square, sum, 2 muls
        transcendentals=M,                                 # one rsqrt per row
        bytes_accessed=2 * M * D * in_size + D * jnp.dtype(weight.dtype).itemsize,
    )

    low_precision_scale = in_size == 2   # bf16/fp16 only (upcast is implicit on v5e)

    out = pl.pallas_call(
        functools.partial(_rmsnorm_kernel, eps=eps,
                          low_precision_scale=low_precision_scale),
        out_shape=jax.ShapeDtypeStruct((M, D), x.dtype),
        grid=grid,
        in_specs=[
            pl.BlockSpec((tm, D), lambda i: (i, 0)),       # x token tile
            w_spec,                                        # scale, resident
        ],
        out_specs=pl.BlockSpec((tm, D), lambda i: (i, 0)),
        compiler_params=pltpu.CompilerParams(
            # NOTE: on v7x, if a profile shows one TensorCore idle, switch this
            # axis to pltpu.CORE_PARALLEL for a straight 2x on this mem-bound op.
            dimension_semantics=("parallel",),
            vmem_limit_bytes=vmem_limit,
        ),
        cost_estimate=cost,
    )(x2d, w2d)

    return out.reshape(orig_shape)


def rms_norm_ref(x, weight, eps: float):
    ms = jnp.mean(jnp.square(x.astype(jnp.float32)), axis=-1, keepdims=True) + eps
    return (x.astype(jnp.float32) * weight.astype(jnp.float32)
            * jax.lax.rsqrt(ms)).astype(x.dtype)


if __name__ == "__main__":
    # Small shapes consistent with the module: batch=2, seq=8, dim=128.
    B, S, D = 2, 8, 128
    eps = 1e-6

    key = jax.random.PRNGKey(0)
    kx, kw = jax.random.split(key, 2)
    x = jax.random.normal(kx, (B, S, D), dtype=jnp.float32)
    # nn.Parameter(torch.ones(dim)) init, perturbed so the scale actually matters.
    weight = jnp.ones((D,), dtype=jnp.float32) + 0.1 * jax.random.normal(
        kw, (D,), dtype=jnp.float32)

    out = jax.block_until_ready(rms_norm(x, weight, eps))
    ref = rms_norm_ref(x, weight, eps)

    assert out.shape == (B, S, D)
    assert out.dtype == x.dtype
    assert jnp.allclose(out, ref, atol=1e-5, rtol=1e-5), "mismatch vs reference"

    print("KERNEL_OK")
</pallas_src>

<mosaic_0001>
module attributes {stable_mosaic.version = 11 : i64} {
  func.func @_rmsnorm_kernel(%arg0: i32, %arg1: memref<16x128xf32, #tpu.memory_space<vmem>>, %arg2: memref<1x128xf32, #tpu.memory_space<vmem>>, %arg3: memref<16x128xf32, #tpu.memory_space<vmem>>) attributes {dimension_semantics = [#tpu.dimension_semantics<parallel>], iteration_bounds = array<i64: 1>, scalar_prefetch = 0 : i64, scratch_operands = 0 : i64, tpu.core_type = #tpu.core_type<tc>, window_params = [{transform_indices = @transform_0, window_bounds = array<i64: 16, 128>}, {pipeline_mode = #tpu.pipeline_mode<synchronous>, transform_indices = @transform_1, window_bounds = array<i64: 1, 128>}, {transform_indices = @transform_2, window_bounds = array<i64: 16, 128>}]} {
    %c0 = arith.constant 0 : index
    %c0_0 = arith.constant 0 : index
    %0 = vector.load %arg1[%c0, %c0_0] : memref<16x128xf32, #tpu.memory_space<vmem>>, vector<16x128xf32>
    %1 = arith.mulf %0, %0 : vector<16x128xf32>
    %cst = arith.constant dense<0.000000e+00> : vector<16xf32>
    %2 = vector.multi_reduction <add>, %1, %cst [1] : vector<16x128xf32> to vector<16xf32>
    %3 = vector.shape_cast %2 : vector<16xf32> to vector<16x1xf32>
    %cst_1 = arith.constant 1.280000e+02 : f32
    %4 = vector.broadcast %cst_1 : f32 to vector<16x1xf32>
    %5 = arith.divf %3, %4 : vector<16x1xf32>
    %cst_2 = arith.constant 9.99999997E-7 : f32
    %6 = vector.broadcast %cst_2 : f32 to vector<16x1xf32>
    %7 = arith.addf %5, %6 : vector<16x1xf32>
    %8 = math.rsqrt %7 : vector<16x1xf32>
    %c0_3 = arith.constant 0 : index
    %c0_4 = arith.constant 0 : index
    %9 = vector.load %arg2[%c0_3, %c0_4] : memref<1x128xf32, #tpu.memory_space<vmem>>, vector<1x128xf32>
    %10 = vector.broadcast %9 : vector<1x128xf32> to vector<16x128xf32>
    %11 = arith.mulf %0, %10 : vector<16x128xf32>
    %12 = vector.broadcast %8 : vector<16x1xf32> to vector<16x128xf32>
    %13 = arith.mulf %11, %12 : vector<16x128xf32>
    %c0_5 = arith.constant 0 : index
    %c0_6 = arith.constant 0 : index
    %14 = vector.load %arg3[%c0_5, %c0_6] : memref<16x128xf32, #tpu.memory_space<vmem>>, vector<16x128xf32>
    tpu.vector_store %arg3[%c0_5, %c0_6], %13 {strides = array<i32>} : memref<16x128xf32, #tpu.memory_space<vmem>>, vector<16x128xf32>,
    return
  }
  func.func @transform_0(%arg0: i32) -> (i32, i32) {
    %c0_i32 = arith.constant 0 : i32
    %c0_i32_0 = arith.constant 0 : i32
    return %arg0, %c0_i32 : i32, i32
  }
  func.func @transform_1(%arg0: i32) -> (i32, i32) {
    %c0_i32 = arith.constant 0 : i32
    %c0_i32_0 = arith.constant 0 : i32
    %c0_i32_1 = arith.constant 0 : i32
    return %c0_i32, %c0_i32_0 : i32, i32
  }
  func.func @transform_2(%arg0: i32) -> (i32, i32) {
    %c0_i32 = arith.constant 0 : i32
    %c0_i32_0 = arith.constant 0 : i32
    return %arg0, %c0_i32 : i32, i32
  }
}

</mosaic_0001>

<bundles_post_ra>
// kernel: tpu_custom_call.1
= control target key start
LH: loop header
LB: loop body
LE: loop exit
PB: predicated region body
PF: predicated region fallthrough
CT: control target
= control target key end

     0   :  { %7 = vsyncpa [#allocation3], 0  ;;  %s158_s0 = inlined_call_operand.hbm [shape: f32[16,128], index: 0, kind: input, shape index: {}]   ;;  %s159_s1 = inlined_call_operand.vmem [shape: f32[1,128], index: 1, kind: input, shape index: {}]   ;;  %s160_s2 = inlined_call_operand.hbm [shape: f32[16,128], index: 2, kind: output, shape index: {}]  }
   0x1   :  { %8 = vsyncpa [#allocation4], 0  ;;  %s124_s9 = smov [#allocation2]  }
   0x2   :  { %s14_s10 = sshll.u32 %s124_s9, 4  ;;  %s15_s10 = int_to_ptr.vmem [resolvable:$true] %s14_s10 }
   0x3   :  { %s88_s11 = scalar_lea.vmem %s15_s10, 256  ;;  %p93_p1 = scmp.lt.s32.totalorder %s15_s10, %s15_s10 }
   0x4   :  { %p89_p0 = scmp.ne.s32.totalorder %s15_s10, %s88_s11  ;;  %p94_p2 = scmp.lt.s32.totalorder %s88_s11, %s88_s11 }
   0x6   :  { %p95_p3 = por %p94_p2, %p93_p1 }
   0x8   :  { %p96_p4 = pnand %p95_p3, %p89_p0 }
   0xa   :  { %99 = shalt.err (!%p96_p4)
}
   0xb   :  { %s125_s12 = smov 128   ;;  %s126_s13 = smov 8  }
   0xc   :  { %20 = dma.hbm_to_vmem [thread:$0]  %s158_s0, 256, %s15_s10, [#allocation3], %s125_s12, %s125_s12, %s126_s13  }
   0xd   :  { %120 = dma.done.wait [#allocation3], 256  }
   0xe   :  { %121 = vsyncadd [#allocation3], 4294967040  ;;  %v26_v0 = vld [vmem:[#allocation2] sm:$0xff]  ;;  %v27_v1 = vld [vmem:[#allocation2 + $0x8] sm:$0xff]  ;;  %s127_s0 = smov [#allocation5]  }
   0xf   :  { %v28_v2 = vmul.f32 %v26_v0, %v26_v0  ;;  %v29_v3 = vmul.f32 %v27_v1, %v27_v1  ;;  %v71_v10 = vld [vmem:[%s159_s1] ss:$0 sm:$0xff]  ;;  %s59_s18 = sshll.u32 %s127_s0, 4  ;;  %s60_s18 = int_to_ptr.vmem [resolvable:$true] %s59_s18 }
  0x10   :  { %v48_v11 = vmul.f32 %v71_v10, %v26_v0  ;;  %v49_v13 = vmul.f32 %v71_v10, %v27_v1  ;;  %s100_s19 = scalar_lea.vmem %s60_s18, 256  ;;  %p105_p6 = scmp.lt.s32.totalorder %s60_s18, %s60_s18 }
  0x11   :  { %30 = vadd.xlane.f32.xlu0 %v28_v2  ;;  %p101_p5 = scmp.ne.s32.totalorder %s60_s18, %s100_s19  ;;  %p106_p7 = scmp.lt.s32.totalorder %s100_s19, %s100_s19 }
  0x13   :  { %p107_p8 = por %p106_p7, %p105_p6 }
  0x15   :  { %32 = vadd.xlane.f32.xlu0 %v29_v3  ;;  %p108_p9 = pnand %p107_p8, %p101_p5 }
  0x9a   :  { %v31_v4 = vpop.xlane.xlu0 %30 }
  0x9b   :  { %v35_v5 = vmul.f32 0.0078125, %v31_v4 }
  0x9d   :  { %v37_v6 = vadd.f32 1e-06, %v35_v5 }
  0x9e   :  { %v33_v7 = vpop.xlane.xlu0 %32 }
  0x9f   :  { %76 = vrsqrt.f32 %v37_v6  ;;  %v36_v8 = vmul.f32 0.0078125, %v33_v7 }
  0xa1   :  { %v38_v9 = vadd.f32 1e-06, %v36_v8 }
  0xa3   :  { %78 = vrsqrt.f32 %v38_v9 }
  0xac   :  { %v77_v12 = vpop.eup %76 }
  0xad   :  { %v50_v14 = vmul.f32 %v77_v12, %v48_v11 }
  0xaf   :  { %52 = vst [vmem:[#allocation5] sm:$0xff] %v50_v14 }
  0xb0   :  { %v79_v15 = vpop.eup %78 }
  0xb1   :  { %v51_v16 = vmul.f32 %v79_v15, %v49_v13 }
  0xb3   :  { %53 = vst [vmem:[#allocation5 + $0x8] sm:$0xff] %v51_v16 }
  0xb4   :  { %111 = shalt.err (!%p108_p9)
}
  0xb5   :  { %65 = dma.vmem_to_hbm [thread:$0]  %s60_s18, 256, %s160_s2, [#allocation4], %s125_s12, %s125_s12, %s126_s13  }
  0xb6   :  { %122 = dma.done.wait [#allocation4], 256  }
  0xb7   :  { %123 = vsyncadd [#allocation4], 4294967040 }
  0xb8   :  { %69 = vsyncpa [#allocation3], 1 }
  0xb9   :  { %70 = vsyncpa [#allocation4], 1 }

</bundles_post_ra>
